<compile_context>
chip_gen: v6e
topology: v6e:2x2x1
jax: 0.10.0
libtpu: 0.0.40
codegen_flags: <defaults>
</compile_context>

<pallas_src>
import math

import jax
import jax.numpy as jnp
from jax.experimental import pallas as pl
from jax.experimental.pallas import tpu as pltpu


_INV_SQRT2 = 1.0 / math.sqrt(2.0)


def _round_up(x, m):
    return (x + m - 1) // m * m


def _make_ffn_kernel(use_tanh_gelu):
    def ffn_kernel(x_ref, w1_ref, b1_ref, w2_ref, b2_ref, o_ref, acc_ref):
        # x_ref:  (tm, d_model)      w1_ref: (d_model, tk)   b1_ref: (1, tk)
        # w2_ref: (tk, d_model)      b2_ref: (1, d_model)
        # o_ref:  (tm, d_model)      acc_ref: (tm, d_model) f32 scratch
        k = pl.program_id(1)

        @pl.when(k == 0)
        def _():
            acc_ref[...] = jnp.zeros_like(acc_ref)

        # First matmul in the input's native dtype (bf16 feeds the MXU
        # directly), f32 accumulation on the MXU.
        h = jnp.dot(x_ref[...], w1_ref[...], preferred_element_type=jnp.float32)
        h = h + b1_ref[...].astype(jnp.float32)
        if use_tanh_gelu:
            # tanh-GELU runs on the EUP (separate VLIW slot, ~free vs the MXU).
            h = jax.nn.gelu(h, approximate=True)
        else:
            # PyTorch nn.GELU() default is the exact erf-based GELU.
            h = 0.5 * h * (1.0 + jax.lax.erf(h * _INV_SQRT2))
        # Dropout: identity in eval/inference mode.
        # TODO(synk): training-mode dropout (pltpu.prng_seed + stateful_bernoulli).

        # Second matmul: cast GELU result back to the weight dtype for the MXU,
        # accumulate in f32.
        acc_ref[...] += jnp.dot(h.astype(w2_ref.dtype), w2_ref[...],
                                preferred_element_type=jnp.float32)

        @pl.when(k == pl.num_programs(1) - 1)
        def _():
            o_ref[...] = (acc_ref[...]
                          + b2_ref[...].astype(jnp.float32)).astype(o_ref.dtype)

    return ffn_kernel


def _vmem_capacity_bytes():
    """Physical per-core VMEM; conservative fallback if the query fails."""
    try:
        return int(pltpu.get_tpu_info().vmem_capacity_bytes)
    except Exception:
        return 64 << 20  # v7x per-core size: safe lower bound across generations


def _tile_footprint_bytes(tm, tk, d_model, in_sz, w_sz, out_sz):
    """Double-buffered operand tiles + scratch + GELU intermediate."""
    dbl = 2  # default double-buffering on every BlockSpec operand
    x_t = dbl * tm * d_model * in_sz
    w1_t = dbl * d_model * tk * w_sz
    b1_t = dbl * tk * w_sz
    w2_t = dbl * tk * d_model * w_sz
    b2_t = dbl * d_model * w_sz
    out_t = dbl * tm * d_model * out_sz
    acc = tm * d_model * 4                       # f32 accumulator scratch
    hbuf = tm * tk * 4 + tm * tk * w_sz          # f32 GELU temp + cast copy
    return x_t + w1_t + b1_t + w2_t + b2_t + out_t + acc + hbuf


def feed_forward(x, w1, b1, w2, b2, *, tile_m=1024, ff_chunk=1024,
                 compute_dtype=None, use_tanh_gelu=False):
    """x: (..., d_model) -> (..., d_model). Fused MLP in one pallas_call.

    compute_dtype: optional (e.g. jnp.bfloat16) cast of x/w1/w2 for the MXU
    (f32 accumulation kept; output restored to x.dtype). Opt-in: changes
    numerics.  use_tanh_gelu: opt-in tanh-GELU (EUP) instead of exact erf.
    """
    orig_shape = x.shape
    out_dtype = x.dtype
    d_model = orig_shape[-1]
    d_ff = w1.shape[1]

    x2d = x.reshape(-1, d_model)
    M = x2d.shape[0]

    if compute_dtype is not None:
        x2d = x2d.astype(compute_dtype)
        w1 = w1.astype(compute_dtype)
        w2 = w2.astype(compute_dtype)

    in_sz = jnp.dtype(x2d.dtype).itemsize
    w_sz = jnp.dtype(w1.dtype).itemsize
    out_sz = jnp.dtype(out_dtype).itemsize
    b_sz = jnp.dtype(b1.dtype).itemsize

    # Sublane packing multiple for the compute dtype (8 f32 / 16 bf16 / 32 i8).
    sub = 8 * max(1, 4 // in_sz)

    # --- initial row tile ---------------------------------------------------
    tm = min(tile_m, _round_up(M, sub))
    if M >= 2 * sub:
        # Keep >= 2 row tiles so both v7x TensorCores get work on the
        # "parallel" M axis (harmless on single-TC chips for these sizes).
        tm = min(tm, _round_up((M + 1) // 2, sub))
    tm = max(sub, _round_up(tm, sub))

    # --- initial d_ff chunk ---------------------------------------------------
    if d_ff <= ff_chunk:
        tk = d_ff
    else:
        tk = _round_up(ff_chunk, 128)

    # --- shrink tiles until the footprint fits the per-generation VMEM budget
    vmem_cap = _vmem_capacity_bytes()
    budget = int(0.85 * vmem_cap)  # headroom for compiler internal scratch
    while _tile_footprint_bytes(tm, tk, d_model, in_sz, w_sz, out_sz) > budget:
        if tk > 128:
            tk = _round_up(max(128, tk // 2), 128)   # shrink hidden chunk first
        elif tm > sub:
            tm = max(sub, _round_up(tm // 2, sub))   # then shrink the row tile
        else:
            break
    # TODO(synk): for very large d_model add an output-column grid axis over
    # d_model (w2/out/acc/b2) instead of only shrinking tm/tk; optionally set
    # pipeline_mode=pl.Buffered(1) on the x/b2 specs to reclaim VMEM on v7x.

    # --- padding -------------------------------------------------------------
    M_pad = _round_up(M, tm)
    if M_pad != M:
        x2d = jnp.pad(x2d, ((0, M_pad - M), (0, 0)))

    d_ff_pad = d_ff if tk == d_ff else _round_up(d_ff, tk)
    if d_ff_pad != d_ff:
        pad = d_ff_pad - d_ff
        # Padded hidden columns contribute gelu(0) * 0 == 0, so results match.
        w1 = jnp.pad(w1, ((0, 0), (0, pad)))
        b1 = jnp.pad(b1, ((0, pad),))
        w2 = jnp.pad(w2, ((0, pad), (0, 0)))

    b1_2d = b1.reshape(1, d_ff_pad)
    b2_2d = b2.reshape(1, d_model)

    grid = (M_pad // tm, d_ff_pad // tk)
    n_row_tiles = grid[0]

    # --- VMEM limit: never below the tile footprint, never above physical ----
    footprint = _tile_footprint_bytes(tm, tk, d_model, in_sz, w_sz, out_sz)
    vmem_limit = max(footprint + (4 << 20), 32 << 20)
    vmem_limit = int(min(vmem_limit, vmem_cap))
    if vmem_limit < footprint:           # last resort: tiles cannot shrink more
        vmem_limit = int(footprint)

    # --- cost estimate (weights are re-streamed once per row tile) -----------
    weight_bytes = ((w1.size + w2.size) * w_sz
                    + (b1_2d.size + b2_2d.size) * b_sz)
    cost = pl.CostEstimate(
        flops=4 * M_pad * d_model * d_ff_pad,          # two matmuls
        transcendentals=M_pad * d_ff_pad,              # erf/tanh in GELU
        bytes_accessed=int(M_pad * d_model * in_sz     # x read once
                           + n_row_tiles * weight_bytes
                           + M_pad * d_model * out_sz),
    )

    out = pl.pallas_call(
        _make_ffn_kernel(use_tanh_gelu),
        out_shape=jax.ShapeDtypeStruct((M_pad, d_model), out_dtype),
        grid_spec=pltpu.PrefetchScalarGridSpec(
            num_scalar_prefetch=0,
            grid=grid,
            in_specs=[
                pl.BlockSpec((tm, d_model), lambda i, k: (i, 0)),    # x tile
                pl.BlockSpec((d_model, tk), lambda i, k: (0, k)),    # w1 chunk
                pl.BlockSpec((1, tk), lambda i, k: (0, k)),          # b1 chunk
                pl.BlockSpec((tk, d_model), lambda i, k: (k, 0)),    # w2 chunk
                pl.BlockSpec((1, d_model), lambda i, k: (0, 0)),     # b2
            ],
            out_specs=pl.BlockSpec((tm, d_model), lambda i, k: (i, 0)),
            scratch_shapes=[pltpu.VMEM((tm, d_model), jnp.float32)],
        ),
        compiler_params=pltpu.CompilerParams(
            dimension_semantics=("parallel", "arbitrary"),
            vmem_limit_bytes=vmem_limit,
        ),
        cost_estimate=cost,
    )(x2d, w1, b1_2d, w2, b2_2d)

    if M_pad != M:
        out = out[:M]
    return out.reshape(orig_shape)


if __name__ == "__main__":
    # Small shapes consistent with the module: tokens of size d_model.
    batch, seq, d_model, d_ff = 2, 8, 32, 256

    key = jax.random.PRNGKey(0)
    kx, kw1, kb1, kw2, kb2 = jax.random.split(key, 5)

    x = jax.random.normal(kx, (batch, seq, d_model), dtype=jnp.float32)

    # Deterministic init mimicking nn.Linear's uniform(-1/sqrt(fan_in), ...).
    lim1 = 1.0 / math.sqrt(d_model)
    lim2 = 1.0 / math.sqrt(d_ff)
    w1 = jax.random.uniform(kw1, (d_model, d_ff), jnp.float32, -lim1, lim1)
    b1 = jax.random.uniform(kb1, (d_ff,), jnp.float32, -lim1, lim1)
    w2 = jax.random.uniform(kw2, (d_ff, d_model), jnp.float32, -lim2, lim2)
    b2 = jax.random.uniform(kb2, (d_model,), jnp.float32, -lim2, lim2)

    # Pure-JAX reference (same semantics as the PyTorch forward in eval mode).
    def gelu_exact(v):
        return 0.5 * v * (1.0 + jax.lax.erf(v * _INV_SQRT2))

    y_ref = gelu_exact(x @ w1 + b1) @ w2 + b2

    # 1) f32, default tiling (single d_ff chunk, 2 row tiles).
    y = jax.block_until_ready(feed_forward(x, w1, b1, w2, b2))
    assert y.shape == x.shape
    assert jnp.allclose(y, y_ref, atol=1e-4, rtol=1e-4), "mismatch (f32, default)"

    # 2) f32, forced multi-chunk streaming over d_ff (exercises the k reduction).
    y2 = jax.block_until_ready(feed_forward(x, w1, b1, w2, b2, ff_chunk=128))
    assert jnp.allclose(y2, y_ref, atol=1e-4, rtol=1e-4), "mismatch (f32, chunked)"

    # 3) bf16 end-to-end (native MXU dtype), looser tolerance.
    xb, w1b, b1b, w2b, b2b = (a.astype(jnp.bfloat16) for a in (x, w1, b1, w2, b2))
    yb = jax.block_until_ready(feed_forward(xb, w1b, b1b, w2b, b2b))
    assert yb.shape == x.shape and yb.dtype == jnp.bfloat16
    assert jnp.allclose(yb.astype(jnp.float32), y_ref, atol=5e-2, rtol=5e-2), \
        "mismatch (bf16 inputs)"

    # 4) opt-in bf16 compute on f32 params (f32 accumulation, f32 output).
    yc = jax.block_until_ready(
        feed_forward(x, w1, b1, w2, b2, compute_dtype=jnp.bfloat16))
    assert yc.dtype == x.dtype
    assert jnp.allclose(yc, y_ref, atol=5e-2, rtol=5e-2), \
        "mismatch (bf16 compute_dtype)"

    print("KERNEL_OK")
</pallas_src>

<mosaic_0001>
module attributes {stable_mosaic.version = 11 : i64} {
  func.func @ffn_kernel(%arg0: i32, %arg1: i32, %arg2: memref<8x32xf32, #tpu.memory_space<vmem>>, %arg3: memref<32x256xf32, #tpu.memory_space<vmem>>, %arg4: memref<1x256xf32, #tpu.memory_space<vmem>>, %arg5: memref<256x32xf32, #tpu.memory_space<vmem>>, %arg6: memref<1x32xf32, #tpu.memory_space<vmem>>, %arg7: memref<8x32xf32, #tpu.memory_space<vmem>>, %arg8: memref<8x32xf32, #tpu.memory_space<vmem>>) attributes {dimension_semantics = [#tpu.dimension_semantics<parallel>, #tpu.dimension_semantics<arbitrary>], iteration_bounds = array<i64: 2, 1>, scalar_prefetch = 0 : i64, scratch_operands = 1 : i64, tpu.core_type = #tpu.core_type<tc>, window_params = [{transform_indices = @transform_0, window_bounds = array<i64: 8, 32>}, {transform_indices = @transform_1, window_bounds = array<i64: 32, 256>}, {transform_indices = @transform_2, window_bounds = array<i64: 1, 256>}, {transform_indices = @transform_3, window_bounds = array<i64: 256, 32>}, {pipeline_mode = #tpu.pipeline_mode<synchronous>, transform_indices = @transform_4, window_bounds = array<i64: 1, 32>}, {transform_indices = @transform_5, window_bounds = array<i64: 8, 32>}]} {
    %c0_i32 = arith.constant 0 : i32
    %0 = arith.cmpi eq, %arg1, %c0_i32 : i32
    %1 = arith.extui %0 : i1 to i32
    %c0_i32_0 = arith.constant 0 : i32
    %2 = arith.cmpi ne, %1, %c0_i32_0 : i32
    scf.if %2 {
      %cst_18 = arith.constant 0.000000e+00 : f32
      %25 = vector.broadcast %cst_18 : f32 to vector<8x32xf32>
      %c0_19 = arith.constant 0 : index
      %c0_20 = arith.constant 0 : index
      %26 = vector.load %arg8[%c0_19, %c0_20] : memref<8x32xf32, #tpu.memory_space<vmem>>, vector<8x32xf32>
      tpu.vector_store %arg8[%c0_19, %c0_20], %25 {strides = array<i32>} : memref<8x32xf32, #tpu.memory_space<vmem>>, vector<8x32xf32>,
    } else {
    }
    %c0 = arith.constant 0 : index
    %c0_1 = arith.constant 0 : index
    %3 = vector.load %arg2[%c0, %c0_1] : memref<8x32xf32, #tpu.memory_space<vmem>>, vector<8x32xf32>
    %c0_2 = arith.constant 0 : index
    %c0_3 = arith.constant 0 : index
    %4 = vector.load %arg3[%c0_2, %c0_3] : memref<32x256xf32, #tpu.memory_space<vmem>>, vector<32x256xf32>
    %cst = arith.constant dense<0.000000e+00> : vector<8x256xf32>
    %5 = tpu.matmul %3, %4, %cst {dimension_numbers = #tpu.dot_dimension_numbers<[1], [0], [0], [1], [0, 0, 1, 1], [], []>} : vector<8x32xf32>, vector<32x256xf32>, vector<8x256xf32> -> vector<8x256xf32>
    %c0_4 = arith.constant 0 : index
    %c0_5 = arith.constant 0 : index
    %6 = vector.load %arg4[%c0_4, %c0_5] : memref<1x256xf32, #tpu.memory_space<vmem>>, vector<1x256xf32>
    %7 = vector.broadcast %6 : vector<1x256xf32> to vector<8x256xf32>
    %8 = arith.addf %5, %7 : vector<8x256xf32>
    %cst_6 = arith.constant 5.000000e-01 : f32
    %9 = vector.broadcast %cst_6 : f32 to vector<8x256xf32>
    %10 = arith.mulf %9, %8 : vector<8x256xf32>
    %cst_7 = arith.constant 0.707106769 : f32
    %11 = vector.broadcast %cst_7 : f32 to vector<8x256xf32>
    %12 = arith.mulf %8, %11 : vector<8x256xf32>
    %13 = math.erf %12 : vector<8x256xf32>
    %cst_8 = arith.constant 1.000000e+00 : f32
    %14 = vector.broadcast %cst_8 : f32 to vector<8x256xf32>
    %15 = arith.addf %14, %13 : vector<8x256xf32>
    %16 = arith.mulf %10, %15 : vector<8x256xf32>
    %c0_9 = arith.constant 0 : index
    %c0_10 = arith.constant 0 : index
    %17 = vector.load %arg8[%c0_9, %c0_10] : memref<8x32xf32, #tpu.memory_space<vmem>>, vector<8x32xf32>
    %c0_11 = arith.constant 0 : index
    %c0_12 = arith.constant 0 : index
    %18 = vector.load %arg5[%c0_11, %c0_12] : memref<256x32xf32, #tpu.memory_space<vmem>>, vector<256x32xf32>
    %cst_13 = arith.constant dense<0.000000e+00> : vector<8x32xf32>
    %19 = tpu.matmul %16, %18, %cst_13 {dimension_numbers = #tpu.dot_dimension_numbers<[1], [0], [0], [1], [0, 0, 1, 1], [], []>} : vector<8x256xf32>, vector<256x32xf32>, vector<8x32xf32> -> vector<8x32xf32>
    %20 = arith.addf %17, %19 : vector<8x32xf32>
    %c0_14 = arith.constant 0 : index
    %c0_15 = arith.constant 0 : index
    %21 = vector.load %arg8[%c0_14, %c0_15] : memref<8x32xf32, #tpu.memory_space<vmem>>, vector<8x32xf32>
    tpu.vector_store %arg8[%c0_14, %c0_15], %20 {strides = array<i32>} : memref<8x32xf32, #tpu.memory_space<vmem>>, vector<8x32xf32>,
    %c0_i32_16 = arith.constant 0 : i32
    %22 = arith.cmpi eq, %arg1, %c0_i32_16 : i32
    %23 = arith.extui %22 : i1 to i32
    %c0_i32_17 = arith.constant 0 : i32
    %24 = arith.cmpi ne, %23, %c0_i32_17 : i32
    scf.if %24 {
      %c0_18 = arith.constant 0 : index
      %c0_19 = arith.constant 0 : index
      %25 = vector.load %arg8[%c0_18, %c0_19] : memref<8x32xf32, #tpu.memory_space<vmem>>, vector<8x32xf32>
      %c0_20 = arith.constant 0 : index
      %c0_21 = arith.constant 0 : index
      %26 = vector.load %arg6[%c0_20, %c0_21] : memref<1x32xf32, #tpu.memory_space<vmem>>, vector<1x32xf32>
      %27 = vector.broadcast %26 : vector<1x32xf32> to vector<8x32xf32>
      %28 = arith.addf %25, %27 : vector<8x32xf32>
      %c0_22 = arith.constant 0 : index
      %c0_23 = arith.constant 0 : index
      %29 = vector.load %arg7[%c0_22, %c0_23] : memref<8x32xf32, #tpu.memory_space<vmem>>, vector<8x32xf32>
      tpu.vector_store %arg7[%c0_22, %c0_23], %28 {strides = array<i32>} : memref<8x32xf32, #tpu.memory_space<vmem>>, vector<8x32xf32>,
    } else {
    }
    return
  }
  func.func @transform_0(%arg0: i32, %arg1: i32) -> (i32, i32) {
    %c0_i32 = arith.constant 0 : i32
    %c0_i32_0 = arith.constant 0 : i32
    return %arg0, %c0_i32 : i32, i32
  }
  func.func @transform_1(%arg0: i32, %arg1: i32) -> (i32, i32) {
    %c0_i32 = arith.constant 0 : i32
    %c0_i32_0 = arith.constant 0 : i32
    return %c0_i32, %arg1 : i32, i32
  }
  func.func @transform_2(%arg0: i32, %arg1: i32) -> (i32, i32) {
    %c0_i32 = arith.constant 0 : i32
    %c0_i32_0 = arith.constant 0 : i32
    return %c0_i32, %arg1 : i32, i32
  }
  func.func @transform_3(%arg0: i32, %arg1: i32) -> (i32, i32) {
    %c0_i32 = arith.constant 0 : i32
    %c0_i32_0 = arith.constant 0 : i32
    return %arg1, %c0_i32 : i32, i32
  }
  func.func @transform_4(%arg0: i32, %arg1: i32) -> (i32, i32) {
    %c0_i32 = arith.constant 0 : i32
    %c0_i32_0 = arith.constant 0 : i32
    %c0_i32_1 = arith.constant 0 : i32
    return %c0_i32, %c0_i32_0 : i32, i32
  }
  func.func @transform_5(%arg0: i32, %arg1: i32) -> (i32, i32) {
    %c0_i32 = arith.constant 0 : i32
    %c0_i32_0 = arith.constant 0 : i32
    return %arg0, %c0_i32 : i32, i32
  }
}

</mosaic_0001>

<bundles_post_ra>
// kernel: tpu_custom_call.1
= control target key start
LH: loop header
LB: loop body
LE: loop exit
PB: predicated region body
PF: predicated region fallthrough
CT: control target
= control target key end

     0   :  { %10 = vsyncpa [#allocation4], 0  ;;  %s1098_s0 = inlined_call_operand.vmem [shape: f32[16,32], index: 0, kind: input, shape index: {}]   ;;  %s1099_s1 = inlined_call_operand.vmem [shape: f32[32,256], index: 1, kind: input, shape index: {}]   ;;  %s1100_s2 = inlined_call_operand.vmem [shape: f32[1,256], index: 2, kind: input, shape index: {}]   ;;  %s1101_s3 = inlined_call_operand.vmem [shape: f32[256,32], index: 3, kind: input, shape index: {}]   ;;  %s1102_s4 = inlined_call_operand.vmem [shape: f32[1,32], index: 4, kind: input, shape index: {}]   ;;  %s1103_s5 = inlined_call_operand.hbm [shape: f32[16,32], index: 5, kind: output, shape index: {}]  }
   0x1   :  { %12 = vsyncpa [#allocation4 + $0x1], 0  ;;  %s869_s18 = smov 0   ;;  %s871_s19 = smov 0  }
   0x2   :  { %s873_s20 = smov 0   ;;  %s875_s21 = smov 0  }
   0x3   :  { %s877_s22 = smov 0   ;;  %s879_s23 = smov 0  }
   0x4 LB: > { %s648_s24 = sadd.s32 4294967295, %s835_s23   ;;  %s649_s25 = sadd.s32 4294967294, %s835_s23   ;;  %s835_s23 = sphi %s879_s23, %s18_s23   ;;  %s831_s22 = sphi %s877_s22, %s1110_s22   ;;  %s827_s21 = sphi %s875_s21, %s1109_s21   ;;  %s823_s20 = sphi %s873_s20, %s1108_s20   ;;  %s819_s19 = sphi %s871_s19, %s1107_s19   ;;  %s815_s18 = sphi %s869_s18, %s1106_s18  }
   0x5   : > { %s30_s26 = sadd.s32 1, %s831_s22  ;;  %s162_s27 = sadd.s32 1, %s823_s20 }
   0x6   : > { %p32_p0 = scmp.ge.s32.totalorder %s30_s26, 2  ;;  %p172_p1 = scmp.ne.s32.totalorder %s823_s20, %s819_s19 }
   0x7   : > { %p173_p2 = scmp.eq.s32.totalorder %s648_s24, 1  ;;  %p178_p3 = scmp.ne.s32.totalorder %s819_s19, %s815_s18 }
   0x8   : > { %s1112_s26 = smov (%p32_p0, %s30_s26), 0  ;;  %p179_p5 = scmp.eq.s32.totalorder %s649_s25, 1 }
   0x9   : > { %p909_p4 = por %p173_p2, %p172_p1  ;;  %s159_s29 = ssub.s32 %s831_s22, %s1112_s26 }
   0xa   : > { %p655_p6 = scmp.ge.s32.totalorder %s835_s23, 1  ;;  %p160_p7 = scmp.eq.s32.totalorder %s159_s29, 0 }
   0xb   : > { %p916_p8 = por %p179_p5, %p178_p3  ;;  %p233_p9 = scmp.lt.s32.totalorder %s835_s23, 3 }
   0xc   : > { %s922_s6 = scalar_select %p160_p7, %s823_s20, %s162_s27  }
   0xd   : > { %p234_p10 = pnand %p655_p6, %p233_p9 }
   0xe   : > { %p274_p11 = scmp.lt.s32.totalorder (!%p234_p10), %s827_s21, 1  ;;  %s271_s27 = sand.u32 (!%p234_p10), 1, %s819_s19  }
   0xf   : > { %237 = sbr.rel (%p234_p10) target bundleno = 469 (0x1d5), region = 40  ;;  %s656_s29 = sshll.u32 (!%p234_p10), %s271_s27, 3 }
  0x10   : > { %s661_s9 = sshll.u32 (!%p234_p10), %s827_s21, 7  ;;  %s273_s10 = scalar_lea.vmem (!%p234_p10), [#allocation3], %s656_s29 }
  0x11   : > { %s537_s13 = scalar_lea.hbm (!%p234_p10), %s1103_s5, %s661_s9  ;;  %s526_s14 = scalar_lea.sflag (!%p234_p10), [#allocation4], %s271_s27 }
  0x12   : > { %s838_s16 = smov (!%p234_p10), [#allocation3]  }
  0x13   : > { %s763_s17 = sshll.u32 (!%p234_p10), %s838_s16, 4  ;;  %s764_s17 = int_to_ptr.vmem [resolvable:$false] %s763_s17 }
  0x14   : > { %v309_v0 = vld [vmem:[%s1099_s1 + $0x38] sm:$0xff]  ;;  %v308_v1 = vld [vmem:[%s1099_s1 + $0x30] sm:$0xff]  ;;  %v307_v2 = vld [vmem:[%s1099_s1 + $0x28] sm:$0xff]  ;;  %vm299_vm0 = vcmask 261120   ;;  %v837_v4 = vmov 0.0   ;;  %s275_s25 = scalar_select %p274_p11, %s827_s21, 1  ;;  %v312_v42 = vlaneseq }
  0x15   : > { %350 = vmatprep.subr.mxu0 %v309_v0  ;;  %v306_v3 = vld [vmem:[%s1099_s1 + $0x20] sm:$0xff]  ;;  %300 = vst.msk [vmem:[#allocation2] sm:$0xff] %vm299_vm0, %v837_v4  ;;  %390 = vmatprep.mubr.f32.mxu0 %v837_v4  ;;  %v305_v5 = vld [vmem:[%s1099_s1 + $0x18] sm:$0xff]  ;;  %v304_v6 = vld [vmem:[%s1099_s1 + $0x10] sm:$0xff]  ;;  %s765_s21 = scalar_lea.vmem %s764_s17, 256 }
  0x16   : > { %351 = vmatpush1.msra.mxu0 %v308_v1  ;;  %v439_v7 = vld [vmem:[%s1101_s3 + $0xf8] sm:$0xff]  ;;  %v438_v9 = vld [vmem:[%s1101_s3 + $0xf0] sm:$0xff]  ;;  %v303_v11 = vld [vmem:[%s1099_s1 + $0x8] sm:$0xff]  ;;  %s657_s15 = sshll.u32 %s275_s25, 3  ;;  %v313_v43 = vshrl.u32 %v312_v42, 7  ;;  %s539_s25 = sshll.u32 %s273_s10, 4  ;;  %s540_s25 = int_to_ptr.vmem [resolvable:$true] %s539_s25 }
  0x17   : > { %352 = vmatprep.subr.mxu0 %v307_v2  ;;  %664 = vmatprep.subr.mxu1 %v439_v7  ;;  %v423_v8 = vld [vmem:[%s1101_s3 + $0x78] sm:$0xff]  ;;  %v422_v10 = vld [vmem:[%s1101_s3 + $0x70] sm:$0xff]  ;;  %v437_v12 = vld [vmem:[%s1101_s3 + $0xe8] sm:$0xff]  ;;  %s277_s8 = scalar_lea.vmem %s1098_s0, %s657_s15  ;;  %s759_s15 = scalar_lea.vmem %s540_s25, 128 }
  0x18   : > { %353 = vmatpush1.msra.mxu0 %v306_v3  ;;  %665 = vmatpush3.msra.mxu1 %v423_v8  ;;  %v302_v13 = vld [vmem:[%s1099_s1] sm:$0xff]  ;;  %v421_v14 = vld [vmem:[%s1101_s3 + $0x68] sm:$0xff]  ;;  %v435_v18 = vld [vmem:[%s1101_s3 + $0xd8] sm:$0xff]  ;;  %v314_v44 = vsub.s32 0, %v313_v43  ;;  %v318_v46 = vsub.s32 1, %v313_v43  ;;  %p760_p12 = scmp.ne.s32.totalorder %s540_s25, %s759_s15  ;;  %p766_p1 = scmp.lt.s32.totalorder %s540_s25, %s764_s17 }
  0x19   : > { %354 = vmatprep.subr.mxu0 %v305_v5  ;;  %666 = vmatprep.subr.mxu1 %v438_v9  ;;  %v301_v15 = vld [vmem:[%s277_s8] sm:$0xff]  ;;  %v419_v19 = vld [vmem:[%s1101_s3 + $0x58] sm:$0xff]  ;;  %v434_v20 = vld [vmem:[%s1101_s3 + $0xd0] sm:$0xff]  ;;  %p767_p2 = scmp.lt.s32.totalorder %s765_s21, %s759_s15 }
  0x1a   : > { %355 = vmatpush1.msra.mxu0 %v304_v6  ;;  %667 = vmatpush3.msra.mxu1 %v422_v10  ;;  %v436_v16 = vld [vmem:[%s1101_s3 + $0xe0] sm:$0xff]  ;;  %v418_v21 = vld [vmem:[%s1101_s3 + $0x50] sm:$0xff]  ;;  %v433_v22 = vld [vmem:[%s1101_s3 + $0xc8] sm:$0xff]  ;;  %p761_p13 = pnand %p760_p12, %p909_p4 }
  0x1b   : > { %356 = vmatprep.subr.mxu0 %v303_v11  ;;  %668 = vmatprep.subr.mxu1 %v437_v12  ;;  %v420_v17 = vld [vmem:[%s1101_s3 + $0x60] sm:$0xff]  ;;  %v417_v23 = vld [vmem:[%s1101_s3 + $0x48] sm:$0xff]  ;;  %v431_v26 = vld [vmem:[%s1101_s3 + $0xb8] sm:$0xff]  ;;  %p768_p3 = por %p767_p2, %p766_p1 }
  0x1c   : > { %357 = vmatpush1.msra.mxu0 %v302_v13  ;;  %669 = vmatpush3.msra.mxu1 %v421_v14  ;;  %v432_v24 = vld [vmem:[%s1101_s3 + $0xc0] sm:$0xff]  ;;  %v415_v27 = vld [vmem:[%s1101_s3 + $0x38] sm:$0xff]  ;;  %v430_v28 = vld [vmem:[%s1101_s3 + $0xb0] sm:$0xff]  ;;  %p762_p0 = pneg %p761_p13 }
  0x1d   : > { %658 = vmatmul.mubr.msk.f32.vlgmr.msra.gmra.mxu0 %vm299_vm0, %v301_v15  ;;  %670 = vmatprep.subr.mxu1 %v436_v16  ;;  %v416_v25 = vld [vmem:[%s1101_s3 + $0x40] sm:$0xff]  ;;  %v414_v29 = vld [vmem:[%s1101_s3 + $0x30] sm:$0xff]  ;;  %v429_v30 = vld [vmem:[%s1101_s3 + $0xa8] sm:$0xff] }
  0x1e   : > { %671 = vmatpush3.msra.mxu1 %v420_v17  ;;  %v413_v31 = vld [vmem:[%s1101_s3 + $0x28] sm:$0xff]  ;;  %v428_v32 = vld [vmem:[%s1101_s3 + $0xa0] sm:$0xff]  ;;  %v427_v34 = vld [vmem:[%s1101_s3 + $0x98] sm:$0xff]  ;;  %p769_p5 = pnand %p768_p3, %p762_p0 }
  0x1f   : > { %672 = vmatprep.subr.mxu1 %v435_v18  ;;  %v412_v33 = vld [vmem:[%s1101_s3 + $0x20] sm:$0xff]  ;;  %v411_v35 = vld [vmem:[%s1101_s3 + $0x18] sm:$0xff]  ;;  %v426_v36 = vld [vmem:[%s1101_s3 + $0x90] sm:$0xff] }
  0x20   : > { %673 = vmatpush3.msra.mxu1 %v419_v19  ;;  %v410_v37 = vld [vmem:[%s1101_s3 + $0x10] sm:$0xff]  ;;  %v425_v38 = vld [vmem:[%s1101_s3 + $0x88] sm:$0xff]  ;;  %v424_v40 = vld [vmem:[%s1101_s3 + $0x80] sm:$0xff] }
  0x21   : > { %674 = vmatprep.subr.mxu1 %v434_v20  ;;  %v409_v39 = vld [vmem:[%s1101_s3 + $0x8] sm:$0xff]  ;;  %v408_v41 = vld [vmem:[%s1101_s3] sm:$0xff] }
  0x22   : > { %675 = vmatpush3.msra.mxu1 %v418_v21  ;;  %v310_v45 = vld [vmem:[%s1100_s2] sm:$0x3] }
  0x23   : > { %676 = vmatprep.subr.mxu1 %v433_v22  ;;  %v315_v47 = vrot.slane %v310_v45, %v314_v44  ;;  %v319_v48 = vrot.slane %v310_v45, %v318_v46  ;;  %v407_v0 = vld [vmem:[#allocation2] sm:$0xff] }
  0x24   : > { %677 = vmatpush3.msra.mxu1 %v417_v23  ;;  %v659_v4 = vld [vmem:[%s1102_s4] ss:$0 sm:$0xff] }
  0x25   : > { %678 = vmatprep.subr.mxu1 %v432_v24 }
  0x26   : > { %679 = vmatpush3.msra.mxu1 %v416_v25 }
  0x27   : > { %680 = vmatprep.subr.mxu1 %v431_v26 }
  0x28   : > { %681 = vmatpush3.msra.mxu1 %v415_v27 }
  0x29   : > { %682 = vmatprep.subr.mxu1 %v430_v28 }
  0x2a   : > { %683 = vmatpush3.msra.mxu1 %v414_v29 }
  0x2b   : > { %684 = vmatprep.subr.mxu1 %v429_v30 }
  0x2c   : > { %685 = vmatpush3.msra.mxu1 %v413_v31 }
  0x2d   : > { %686 = vmatprep.subr.mxu1 %v428_v32 }
  0x2e   : > { %687 = vmatpush3.msra.mxu1 %v412_v33 }
  0x2f   : > { %688 = vmatprep.subr.mxu1 %v427_v34 }
  0x30   : > { %689 = vmatpush3.msra.mxu1 %v411_v35 }
  0x31   : > { %690 = vmatprep.subr.mxu1 %v426_v36 }
  0x32   : > { %691 = vmatpush3.msra.mxu1 %v410_v37 }
  0x33   : > { %692 = vmatprep.subr.mxu1 %v425_v38 }
  0x34   : > { %693 = vmatpush3.msra.mxu1 %v409_v39 }
  0x35   : > { %694 = vmatprep.subr.mxu1 %v424_v40 }
  0x36   : > { %695 = vmatpush3.msra.mxu1 %v408_v41 }
  0xdd   : > { %v392_v49 = vpop.f32.mrf.mxu0 }
  0xde   : > { %v393_v50 = vadd.f32 %v392_v49, %v315_v47 }
  0xdf   : > { %v394_v51 = vpop.f32.mrf.mxu0 }
  0xe0   : > { %v399_v52 = vmul.f32 0.70710677, %v393_v50  ;;  %v395_v53 = vadd.f32 %v394_v51, %v319_v48  ;;  %v397_v60 = vmul.f32 0.5, %v393_v50 }
  0xe2   : > { %755 = verf.f32 %v399_v52  ;;  %v400_v54 = vmul.f32 0.70710677, %v395_v53  ;;  %v398_v58 = vmul.f32 0.5, %v395_v53 }
  0xe4   : > { %757 = verf.f32 %v400_v54 }
  0xef   : > { %v756_v55 = vpop.eup %755 }
  0xf0   : > { %v403_v57 = vadd.f32 1.0, %v756_v55 }
  0xf1   : > { %v758_v56 = vpop.eup %757 }
  0xf2   : > { %v404_v59 = vadd.f32 1.0, %v758_v56  ;;  %v405_v62 = vmul.f32 %v403_v57, %v397_v60 }
  0xf4   : > { %v406_v61 = vmul.f32 %v404_v59, %v398_v58 }
  0xf6   : > { %504 = vmatprep.mubr.f32.mxu1 %v406_v61 }
  0xf7   : > { %505 = vmatmul.mubr.f32.vlgmr.msra.gmra.mxu1 %v405_v62 }
 0x1b7   : > { %v696_v63 = vpop.f32.mrf.mxu1 }
 0x1b9   : > { %v697_v1 = vpop.f32.mrf.mxu1 }
 0x1ba   : > { %v698_v2 = vadd.f32 %v697_v1, %v696_v63 }
 0x1bc   : > { %v510_v3 = vadd.f32 %v698_v2, %v407_v0 }
 0x1be   : > { %511 = vst.msk [vmem:[#allocation2] sm:$0xff] %vm299_vm0, %v510_v3 }
 0x1c5   : > { %v515_v5 = vld [vmem:[#allocation2] sm:$0xff] }
 0x1c6   : > { %v523_v6 = vadd.f32 %v659_v4, %v515_v5 }
 0x1c8   : > { %524 = vst.msk [vmem:[%s273_s10] sm:$0xff] %vm299_vm0, %v523_v6 }
 0x1c9   : > { %772 = shalt.err (!%p769_p5)
}
 0x1ca   : > { %s773_s24 = scalar_lea.hbm %s537_s13, 128  ;;  %s777_s7 = scalar_lea.hbm %s1103_s5, 256 }
 0x1cb   : > { %p774_p6 = scmp.ne.s32.totalorder %s537_s13, %s773_s24  ;;  %p778_p10 = scmp.lt.s32.totalorder %s537_s13, %s1103_s5 }
 0x1cc   : > { %p779_p11 = scmp.lt.s32.totalorder %s777_s7, %s773_s24 }
 0x1cd   : > { %p775_p7 = pnand %p774_p6, %p909_p4 }
 0x1ce   : > { %p780_p12 = por %p779_p11, %p778_p10 }
 0x1cf   : > { %p776_p9 = pneg %p775_p7 }
 0x1d1   : > { %p781_p13 = pnand %p780_p12, %p776_p9 }
 0x1d3   : > { %784 = shalt.err (!%p781_p13)
}
 0x1d4   : > { %699 = dma.vmem_to_hbm [thread:$0]  (%p909_p4), %s540_s25, 128, %s537_s13, %s526_s14  }
 0x1d5 PF: > { %p705_p0 = scmp.ge.s32.totalorder %s835_s23, 2  ;;  %s551_s10 = sand.u32 1, %s815_s18  }
 0x1d6   : > { %s552_s11 = scalar_lea.sflag [#allocation4], %s551_s10 }
 0x1d7   : > { %p702_p1 = pnand %p705_p0, %p916_p8 }
 0x1d9   : > { %p703_p2 = pneg %p702_p1 }
 0x1db   : > { %810 = dma.done.wait (%p703_p2), %s552_s11, 128  }
 0x1dc   : > { %812 = vsyncadd (%p703_p2), %s552_s11, 4294967168  ;;  %s18_s23 = sadd.s32 1, %s835_s23   ;;  %s1106_s18 = smov %s819_s19 }
 0x1dd   : > { %p15_p3 = scmp.ge.s32.totalorder %s18_s23, 4   ;;  %s1107_s19 = smov %s823_s20 }
 0x1de   : > { %s1108_s20 = smov %s922_s6  ;;  %s1109_s21 = smov %s831_s22 }
 0x1df   : > { %s1110_s22 = smov %s1112_s26  ;;  %17 = sbr.rel (!%p15_p3) target bundleno = 4 (0x4), region = 92 }
 0x1e4   :  { %557 = vsyncpa [#allocation4], 1 }
 0x1e5   :  { %559 = vsyncpa [#allocation4 + $0x1], 1 }

</bundles_post_ra>
